<compile_context>
chip_gen: v7x
topology: tpu7x:2x2x1
jax: 0.10.0
libtpu: 0.0.40
codegen_flags: <defaults>
</compile_context>

<pallas_src>
import jax
import jax.numpy as jnp
from jax import lax
from jax.experimental import pallas as pl
from jax.experimental.pallas import tpu as pltpu

LN_EPS = 1e-5  # nn.LayerNorm default


def _round_up(x, m):
    return (x + m - 1) // m * m


def fusion_kernel(x_ref, w_in_ref, b_ref, wo_ref, bo_ref, out_ref):
    # Fused input projection: [tile_b, 2*D_in] @ [2*D_in, D_out], bf16 in, f32 acc.
    fused = jnp.dot(x_ref[...], w_in_ref[...],
                    preferred_element_type=jnp.float32) + b_ref[...]

    # LayerNorm over the last dim in f32 (biased variance, like torch.nn.LayerNorm).
    # gamma/beta were folded into wo/bo in the wrapper.
    mean = jnp.mean(fused, axis=-1, keepdims=True)
    centered = fused - mean
    var = jnp.mean(centered * centered, axis=-1, keepdims=True)
    normed = centered * lax.rsqrt(var + LN_EPS)

    # Output projection (bf16 operands, f32 accumulation).
    out = jnp.dot(normed.astype(wo_ref.dtype), wo_ref[...],
                  preferred_element_type=jnp.float32) + bo_ref[...]
    out_ref[...] = out.astype(out_ref.dtype)


def prepare_params(raw):
    """Fold the module parameters for the fused kernel.

    - Concatenate Wv/Wt along K (one matmul instead of two).
    - b_fused = bv + bt.
    - Fold LayerNorm affine into the output projection:
        Wo' = diag(gamma) @ Wo,  bo' = beta @ Wo + bo.
    - Cast matmul weights to bf16 (f32 accumulation happens in-kernel).
    """
    d_out = raw["wo"].shape[1]
    w_cat = jnp.concatenate([raw["wv"], raw["wt"]], axis=0)            # [2*D_in, D_out]
    b_fused = (raw["bv"] + raw["bt"]).astype(jnp.float32)              # [1, D_out]
    wo_folded = raw["gamma"].reshape(d_out, 1) * raw["wo"]             # row-scale
    bo_folded = (raw["beta"] @ raw["wo"] + raw["bo"]).astype(jnp.float32)
    return {
        "w_cat": w_cat.astype(jnp.bfloat16),
        "b_fused": b_fused,
        "wo": wo_folded.astype(jnp.bfloat16),
        "bo": bo_folded,
    }


def modality_fusion(visual, textual, fused_params, *, tile_b=256):
    """visual, textual: [B, D_in] float32. Returns [B, D_out] float32."""
    B, D_in = visual.shape
    K, D_out = fused_params["w_cat"].shape
    assert K == 2 * D_in

    # Merge the two projections into one K=2*D_in matmul.
    x = jnp.concatenate([visual, textual], axis=-1).astype(jnp.bfloat16)

    # Batch tiling: multiple of 8 sublanes; pad B so every grid step is full
    # (padded zero rows are harmless: LN of a constant row -> 0, result discarded).
    tile_b = _round_up(max(8, min(tile_b, _round_up(B, 8))), 8)
    B_pad = _round_up(B, tile_b)
    if B_pad != B:
        x = jnp.pad(x, ((0, B_pad - B), (0, 0)))
    grid = (B_pad // tile_b,)

    x_spec = pl.BlockSpec((tile_b, K), lambda i: (i, 0))
    out_spec = pl.BlockSpec((tile_b, D_out), lambda i: (i, 0))
    # Weights / biases: full (replicated) blocks; block index never changes.
    w_in_spec = pl.BlockSpec((K, D_out), lambda i: (0, 0))
    wo_spec = pl.BlockSpec((D_out, D_out), lambda i: (0, 0))
    vec_spec = pl.BlockSpec((1, D_out), lambda i: (0, 0))

    # Explicit VMEM budget (double-buffered activations + resident bf16 weights),
    # clamped to v7x's 64 MiB physical VMEM.
    vmem_est = (2 * (tile_b * K * 2 + tile_b * D_out * 4)
                + (K * D_out + D_out * D_out) * 2
                + 4 * D_out * 4
                + (2 << 20))
    vmem_limit = int(min(64 * 1024 * 1024, max(vmem_est, 16 * 1024 * 1024)))

    cost = pl.CostEstimate(
        flops=2 * B_pad * (K + D_out) * D_out,
        transcendentals=B_pad,  # one rsqrt per row
        bytes_accessed=(B_pad * K * 2
                        + (K * D_out + D_out * D_out) * 2
                        + 2 * D_out * 4
                        + B_pad * D_out * 4),
    )

    out = pl.pallas_call(
        fusion_kernel,
        out_shape=jax.ShapeDtypeStruct((B_pad, D_out), jnp.float32),
        grid_spec=pltpu.PrefetchScalarGridSpec(
            num_scalar_prefetch=0,
            grid=grid,
            in_specs=[
                x_spec,               # concat(visual, textual), bf16
                w_in_spec, vec_spec,  # W_cat (bf16), b_fused (f32)
                wo_spec, vec_spec,    # Wo' (bf16), bo' (f32)
            ],
            out_specs=out_spec,
        ),
        compiler_params=pltpu.CompilerParams(
            dimension_semantics=("parallel",),
            vmem_limit_bytes=vmem_limit),
        cost_estimate=cost,
    )(x, fused_params["w_cat"], fused_params["b_fused"],
      fused_params["wo"], fused_params["bo"])

    return out[:B]


def init_params(key, input_dim, output_dim):
    """Deterministic synthetic init (shapes match the PyTorch module, weights transposed)."""
    ks = jax.random.split(key, 8)
    s_in = 1.0 / jnp.sqrt(input_dim)
    s_out = 1.0 / jnp.sqrt(output_dim)
    return {
        "wv": jax.random.uniform(ks[0], (input_dim, output_dim), jnp.float32, -s_in, s_in),
        "bv": jax.random.uniform(ks[1], (1, output_dim), jnp.float32, -s_in, s_in),
        "wt": jax.random.uniform(ks[2], (input_dim, output_dim), jnp.float32, -s_in, s_in),
        "bt": jax.random.uniform(ks[3], (1, output_dim), jnp.float32, -s_in, s_in),
        "gamma": jnp.ones((1, output_dim), jnp.float32),
        "beta": jnp.zeros((1, output_dim), jnp.float32),
        "wo": jax.random.uniform(ks[4], (output_dim, output_dim), jnp.float32, -s_out, s_out),
        "bo": jax.random.uniform(ks[5], (1, output_dim), jnp.float32, -s_out, s_out),
    }


def reference(visual, textual, p):
    """Pure-f32 reference matching the PyTorch module semantics."""
    vp = visual @ p["wv"] + p["bv"]
    tp = textual @ p["wt"] + p["bt"]
    fused = vp + tp
    mean = jnp.mean(fused, axis=-1, keepdims=True)
    var = jnp.mean((fused - mean) ** 2, axis=-1, keepdims=True)
    normed = (fused - mean) / jnp.sqrt(var + LN_EPS)
    normed = normed * p["gamma"] + p["beta"]
    return normed @ p["wo"] + p["bo"]


if __name__ == "__main__":
    # Small demo shapes: B not a multiple of tile_b (exercises padding) and a
    # 2-step grid (so v7x's two TensorCores both get work).
    B, D_IN, D_OUT = 48, 256, 128

    key = jax.random.PRNGKey(0)
    k_v, k_t, k_p = jax.random.split(key, 3)
    visual = jax.random.normal(k_v, (B, D_IN), jnp.float32)
    textual = jax.random.normal(k_t, (B, D_IN), jnp.float32)
    raw_params = init_params(k_p, D_IN, D_OUT)
    fused_params = prepare_params(raw_params)

    out = modality_fusion(visual, textual, fused_params, tile_b=32)
    out = jax.block_until_ready(out)

    ref = reference(visual, textual, raw_params)
    assert out.shape == (B, D_OUT)
    # bf16 matmul operands with f32 accumulation -> relaxed tolerance vs. pure-f32 ref.
    assert jnp.allclose(out, ref, atol=3e-2, rtol=3e-2), "mismatch vs reference"

    print("KERNEL_OK")
</pallas_src>

<mosaic_0001>
module attributes {stable_mosaic.version = 11 : i64} {
  func.func @fusion_kernel(%arg0: i32, %arg1: memref<32x512xbf16, #tpu.memory_space<vmem>>, %arg2: memref<512x128xbf16, #tpu.memory_space<vmem>>, %arg3: memref<1x128xf32, #tpu.memory_space<vmem>>, %arg4: memref<128x128xbf16, #tpu.memory_space<vmem>>, %arg5: memref<1x128xf32, #tpu.memory_space<vmem>>, %arg6: memref<32x128xf32, #tpu.memory_space<vmem>>) attributes {dimension_semantics = [#tpu.dimension_semantics<parallel>], iteration_bounds = array<i64: 2>, scalar_prefetch = 0 : i64, scratch_operands = 0 : i64, tpu.core_type = #tpu.core_type<tc>, window_params = [{transform_indices = @transform_0, window_bounds = array<i64: 32, 512>}, {pipeline_mode = #tpu.pipeline_mode<synchronous>, transform_indices = @transform_1, window_bounds = array<i64: 512, 128>}, {pipeline_mode = #tpu.pipeline_mode<synchronous>, transform_indices = @transform_2, window_bounds = array<i64: 1, 128>}, {pipeline_mode = #tpu.pipeline_mode<synchronous>, transform_indices = @transform_3, window_bounds = array<i64: 128, 128>}, {pipeline_mode = #tpu.pipeline_mode<synchronous>, transform_indices = @transform_4, window_bounds = array<i64: 1, 128>}, {transform_indices = @transform_5, window_bounds = array<i64: 32, 128>}]} {
    %c0 = arith.constant 0 : index
    %c0_0 = arith.constant 0 : index
    %0 = vector.load %arg1[%c0, %c0_0] : memref<32x512xbf16, #tpu.memory_space<vmem>>, vector<32x512xbf16>
    %c0_1 = arith.constant 0 : index
    %c0_2 = arith.constant 0 : index
    %1 = vector.load %arg2[%c0_1, %c0_2] : memref<512x128xbf16, #tpu.memory_space<vmem>>, vector<512x128xbf16>
    %cst = arith.constant dense<0.000000e+00> : vector<32x128xf32>
    %2 = tpu.matmul %0, %1, %cst {dimension_numbers = #tpu.dot_dimension_numbers<[1], [0], [0], [1], [0, 0, 1, 1], [], []>} : vector<32x512xbf16>, vector<512x128xbf16>, vector<32x128xf32> -> vector<32x128xf32>
    %c0_3 = arith.constant 0 : index
    %c0_4 = arith.constant 0 : index
    %3 = vector.load %arg3[%c0_3, %c0_4] : memref<1x128xf32, #tpu.memory_space<vmem>>, vector<1x128xf32>
    %4 = vector.broadcast %3 : vector<1x128xf32> to vector<32x128xf32>
    %5 = arith.addf %2, %4 : vector<32x128xf32>
    %cst_5 = arith.constant dense<0.000000e+00> : vector<32xf32>
    %6 = vector.multi_reduction <add>, %5, %cst_5 [1] : vector<32x128xf32> to vector<32xf32>
    %7 = vector.shape_cast %6 : vector<32xf32> to vector<32x1xf32>
    %cst_6 = arith.constant 1.280000e+02 : f32
    %8 = vector.broadcast %cst_6 : f32 to vector<32x1xf32>
    %9 = arith.divf %7, %8 : vector<32x1xf32>
    %10 = vector.broadcast %9 : vector<32x1xf32> to vector<32x128xf32>
    %11 = arith.subf %5, %10 : vector<32x128xf32>
    %12 = arith.mulf %11, %11 : vector<32x128xf32>
    %cst_7 = arith.constant dense<0.000000e+00> : vector<32xf32>
    %13 = vector.multi_reduction <add>, %12, %cst_7 [1] : vector<32x128xf32> to vector<32xf32>
    %14 = vector.shape_cast %13 : vector<32xf32> to vector<32x1xf32>
    %cst_8 = arith.constant 1.280000e+02 : f32
    %15 = vector.broadcast %cst_8 : f32 to vector<32x1xf32>
    %16 = arith.divf %14, %15 : vector<32x1xf32>
    %cst_9 = arith.constant 9.99999974E-6 : f32
    %17 = vector.broadcast %cst_9 : f32 to vector<32x1xf32>
    %18 = arith.addf %16, %17 : vector<32x1xf32>
    %19 = math.rsqrt %18 : vector<32x1xf32>
    %20 = vector.broadcast %19 : vector<32x1xf32> to vector<32x128xf32>
    %21 = arith.mulf %11, %20 : vector<32x128xf32>
    %22 = arith.truncf %21 : vector<32x128xf32> to vector<32x128xbf16>
    %c0_10 = arith.constant 0 : index
    %c0_11 = arith.constant 0 : index
    %23 = vector.load %arg4[%c0_10, %c0_11] : memref<128x128xbf16, #tpu.memory_space<vmem>>, vector<128x128xbf16>
    %cst_12 = arith.constant dense<0.000000e+00> : vector<32x128xf32>
    %24 = tpu.matmul %22, %23, %cst_12 {dimension_numbers = #tpu.dot_dimension_numbers<[1], [0], [0], [1], [0, 0, 1, 1], [], []>} : vector<32x128xbf16>, vector<128x128xbf16>, vector<32x128xf32> -> vector<32x128xf32>
    %c0_13 = arith.constant 0 : index
    %c0_14 = arith.constant 0 : index
    %25 = vector.load %arg5[%c0_13, %c0_14] : memref<1x128xf32, #tpu.memory_space<vmem>>, vector<1x128xf32>
    %26 = vector.broadcast %25 : vector<1x128xf32> to vector<32x128xf32>
    %27 = arith.addf %24, %26 : vector<32x128xf32>
    %c0_15 = arith.constant 0 : index
    %c0_16 = arith.constant 0 : index
    %28 = vector.load %arg6[%c0_15, %c0_16] : memref<32x128xf32, #tpu.memory_space<vmem>>, vector<32x128xf32>
    tpu.vector_store %arg6[%c0_15, %c0_16], %27 {strides = array<i32>} : memref<32x128xf32, #tpu.memory_space<vmem>>, vector<32x128xf32>,
    return
  }
  func.func @transform_0(%arg0: i32) -> (i32, i32) {
    %c0_i32 = arith.constant 0 : i32
    %c0_i32_0 = arith.constant 0 : i32
    return %arg0, %c0_i32 : i32, i32
  }
  func.func @transform_1(%arg0: i32) -> (i32, i32) {
    %c0_i32 = arith.constant 0 : i32
    %c0_i32_0 = arith.constant 0 : i32
    %c0_i32_1 = arith.constant 0 : i32
    return %c0_i32, %c0_i32_0 : i32, i32
  }
  func.func @transform_2(%arg0: i32) -> (i32, i32) {
    %c0_i32 = arith.constant 0 : i32
    %c0_i32_0 = arith.constant 0 : i32
    %c0_i32_1 = arith.constant 0 : i32
    return %c0_i32, %c0_i32_0 : i32, i32
  }
  func.func @transform_3(%arg0: i32) -> (i32, i32) {
    %c0_i32 = arith.constant 0 : i32
    %c0_i32_0 = arith.constant 0 : i32
    %c0_i32_1 = arith.constant 0 : i32
    return %c0_i32, %c0_i32_0 : i32, i32
  }
  func.func @transform_4(%arg0: i32) -> (i32, i32) {
    %c0_i32 = arith.constant 0 : i32
    %c0_i32_0 = arith.constant 0 : i32
    %c0_i32_1 = arith.constant 0 : i32
    return %c0_i32, %c0_i32_0 : i32, i32
  }
  func.func @transform_5(%arg0: i32) -> (i32, i32) {
    %c0_i32 = arith.constant 0 : i32
    %c0_i32_0 = arith.constant 0 : i32
    return %arg0, %c0_i32 : i32, i32
  }
}

</mosaic_0001>

<bundles_post_ra>
// kernel: tpu_custom_call.1
= control target key start
LH: loop header
LB: loop body
LE: loop exit
PB: predicated region body
PF: predicated region fallthrough
CT: control target
= control target key end

     0   :  { %10 = vsyncpa [#allocation3], 0  ;;  %s1702_s0 = inlined_call_operand.hbm [shape: bf16[64,512], index: 0, kind: input, shape index: {}]   ;;  %s1703_s1 = inlined_call_operand.hbm [shape: bf16[512,128], index: 1, kind: input, shape index: {}]   ;;  %s1704_s2 = inlined_call_operand.vmem [shape: f32[1,128], index: 2, kind: input, shape index: {}]   ;;  %s1705_s3 = inlined_call_operand.hbm [shape: bf16[128,128], index: 3, kind: input, shape index: {}]   ;;  %s1706_s4 = inlined_call_operand.vmem [shape: f32[1,128], index: 4, kind: input, shape index: {}]   ;;  %s1707_s5 = inlined_call_operand.hbm [shape: f32[64,128], index: 5, kind: output, shape index: {}]  }
   0x1   :  { %12 = vsyncpa [#allocation3 + $0x1], 0 }
   0x2   :  { %13 = vsyncpa [#allocation6], 0 }
   0x3   :  { %14 = vsyncpa [#allocation4], 0 }
   0x4   :  { %16 = vsyncpa [#allocation4 + $0x1], 0  ;;  %s1451_s18 = smov 0   ;;  %s1453_s19 = smov 0  }
   0x5   :  { %s1455_s20 = smov 0   ;;  %s1457_s21 = smov 0  }
   0x6 LB: > { %s1472_s22 = sadd.s32 4294967295, %s1409_s21   ;;  %s962_s23 = sadd.s32 4294967294, %s1409_s21   ;;  %s1409_s21 = sphi %s1457_s21, %s1727_s21   ;;  %s1405_s20 = sphi %s1455_s20, %s1726_s20   ;;  %s1401_s19 = sphi %s1453_s19, %s1725_s19   ;;  %s1397_s18 = sphi %s1451_s18, %s1724_s18  }
   0x7   : > { %p42_p0 = scmp.ne.s32.totalorder %s1401_s19, %s1397_s18  ;;  %p1708_p1 = scmp.eq.s32.totalorder %s1472_s22, 0 }
   0x8   : > { %p156_p3 = scmp.eq.s32.totalorder %s962_s23, 1  ;;  %p963_p5 = scmp.ge.s32.totalorder %s1409_s21, 1 }
   0x9   : > { %p1481_p4 = por %p1708_p1, %p42_p0  ;;  %p163_p7 = scmp.lt.s32.totalorder %s1409_s21, 3 }
   0xa   : > { %p1486_p6 = por %p156_p3, %p42_p0  ;;  %s1411_s27 = smov [#allocation5]  }
   0xb   : > { %s1711_s24 = scalar_select %p1481_p4, 1, 0 }
   0xc   : > { %s1712_s25 = scalar_select %p1486_p6, 1, 0 }
   0xd   : > { %p1491_p8 = pnand %p963_p5, %p163_p7  ;;  %s175_s28 = sshll.u32 %s1411_s27, 4  ;;  %s1495_s28 = int_to_ptr.vmem [resolvable:$true] %s175_s28 }
   0xe   : > { %s1412_s30 = smov [#allocation7]   ;;  %s1253_s9 = scalar_lea.hbm %s1703_s1, 4096 }
   0xf   : > { %p1132_p9 = pneg %p1491_p8  ;;  %s191_s6 = sshll.u32 %s1412_s30, 4  ;;  %s1506_s6 = int_to_ptr.vmem [resolvable:$true] %s191_s6 }
  0x10   : > { %p1254_p12 = scmp.ne.s32.totalorder %s1703_s1, %s1253_s9  ;;  %p1260_p5 = scmp.lt.u32.totalorder %s1253_s9, %s1703_s1 }
  0x11   : > { %p1502_p11 = pnand %p1132_p9, %p1708_p1 }
  0x13   : > { %p1255_p13 = pneg %p1502_p11 }
  0x15   : > { %p1256_p0 = pnand %p1255_p13, %p1254_p12 }
  0x17   : > { %p1257_p3 = pneg %p1256_p0 }
  0x19   : > { %p1262_p7 = pnand %p1260_p5, %p1257_p3 }
  0x1b   : > { %1265 = shalt.err (!%p1262_p7)
}
  0x1c   : > { %s1266_s14 = scalar_lea.vmem %s1495_s28, 4096  ;;  %p1274_p2 = scmp.lt.s32.totalorder %s1495_s28, %s1495_s28 }
  0x1d   : > { %p1267_p9 = scmp.ne.s32.totalorder %s1495_s28, %s1266_s14  ;;  %p1275_p12 = scmp.lt.s32.totalorder %s1266_s14, %s1266_s14 }
  0x1f   : > { %p1269_p10 = pnand %p1267_p9, %p1255_p13  ;;  %p1276_p0 = por %p1275_p12, %p1274_p2 }
  0x21   : > { %p1270_p1 = pneg %p1269_p10 }
  0x23   : > { %p1277_p6 = pnand %p1276_p0, %p1270_p1 }
  0x25   : > { %1280 = shalt.err (!%p1277_p6)
}
  0x26   : > { %s1413_s15 = smov 64   ;;  %s1414_s16 = smov 4  }
  0x27   : > { %1135 = dma.hbm_to_vmem [thread:$0]  (!%p1502_p11), %s1703_s1, 4096, %s1495_s28, [#allocation6], %s1413_s15, %s1413_s15, %s1414_s16  }
  0x28   : > { %s1281_s7 = scalar_lea.hbm %s1705_s3, 1024 }
  0x29   : > { %p1282_p2 = scmp.ne.s32.totalorder %s1705_s3, %s1281_s7  ;;  %p1288_p10 = scmp.lt.u32.totalorder %s1281_s7, %s1705_s3 }
  0x2b   : > { %p1284_p1 = pnand %p1282_p2, %p1255_p13 }
  0x2d   : > { %p1285_p6 = pneg %p1284_p1 }
  0x2f   : > { %p1290_p3 = pnand %p1288_p10, %p1285_p6 }
  0x31   : > { %1293 = shalt.err (!%p1290_p3)
}
  0x32   : > { %s1294_s28 = scalar_lea.vmem %s1506_s6, 1024  ;;  %p1302_p12 = scmp.lt.s32.totalorder %s1506_s6, %s1506_s6 }
  0x33   : > { %p1295_p5 = scmp.ne.s32.totalorder %s1506_s6, %s1294_s28  ;;  %p1303_p0 = scmp.lt.s32.totalorder %s1294_s28, %s1294_s28 }
  0x35   : > { %p1297_p7 = pnand %p1295_p5, %p1255_p13  ;;  %p1304_p2 = por %p1303_p0, %p1302_p12 }
  0x37   : > { %p1298_p9 = pneg %p1297_p7 }
  0x39   : > { %p1305_p1 = pnand %p1304_p2, %p1298_p9 }
  0x3b   : > { %1308 = shalt.err (!%p1305_p1)
}
  0x3c   : > { %1138 = dma.hbm_to_vmem [thread:$0]  (!%p1502_p11), %s1705_s3, 1024, %s1506_s6, [#allocation6], %s1413_s15, %s1413_s15, %s1414_s16  }
  0x3d   : > { %s1561_s14 = sadd.s32 1, %s1409_s21   ;;  %s29_s29 = sadd.s32 1, %s1405_s20 }
  0x3e   : > { %s26_s17 = ssub.s32 %s1409_s21, %s1561_s14  ;;  %p36_p13 = scmp.ne.s32.totalorder %s1405_s20, %s1401_s19 }
  0x3f   : > { %p27_p6 = scmp.eq.s32.totalorder %s26_s17, 0  ;;  %p37_p10 = scmp.eq.s32.totalorder %s1409_s21, 0 }
  0x40   : > { %p1715_p3 = scmp.eq.s32.totalorder %s1472_s22, 1  ;;  %p1149_p7 = scmp.lt.s32.totalorder %s1409_s21, 2 }
  0x41   : > { %s1577_s27 = scalar_select %p27_p6, %s1405_s20, %s29_s29  }
  0x42   : > { %p1571_p5 = por %p1715_p3, %p36_p13  ;;  %p38_p9 = por %p37_p10, %p36_p13 }
  0x43   : > { %s208_s30 = sand.u32 1, %s1405_s20   ;;  %s1032_s6 = sshll.u32 %s1409_s21, 10 }
  0x44   : > { %s1716_s23 = scalar_select %p1571_p5, 1, 0 }
  0x45   : > { %s967_s7 = sshll.u32 %s208_s30, 6  ;;  %s1584_s8 = scalar_lea.hbm %s1702_s0, %s1032_s6 }
  0x46   : > { %s212_s9 = scalar_lea.vmem [#allocation2], %s967_s7  ;;  %p1588_p11 = pnand %p1149_p7, %p38_p9 }
  0x47   : > { %s220_s10 = sshll.u32 %s212_s9, 4  ;;  %s1592_s28 = scalar_lea.sflag [#allocation3], %s208_s30  ;;  %s1586_s10 = int_to_ptr.vmem [resolvable:$true] %s220_s10 }
  0x48   : > { %s1309_s12 = scalar_lea.hbm %s1584_s8, 1024  ;;  %p1311_p0 = pneg %p1588_p11 }
  0x49   : > { %p1310_p12 = scmp.ne.s32.totalorder %s1584_s8, %s1309_s12  ;;  %s1314_s17 = scalar_lea.hbm %s1702_s0, 2048 }
  0x4a   : > { %p1315_p13 = scmp.lt.u32.totalorder %s1584_s8, %s1702_s0  ;;  %p1316_p6 = scmp.lt.u32.totalorder %s1314_s17, %s1309_s12 }
  0x4b   : > { %p1312_p2 = pnand %p1311_p0, %p1310_p12  ;;  %p1318_p3 = scmp.lt.u32.totalorder %s1309_s12, %s1584_s8 }
  0x4c   : > { %p1317_p10 = por %p1316_p6, %p1315_p13 }
  0x4d   : > { %p1313_p1 = pneg %p1312_p2 }
  0x4e   : > { %p1319_p7 = por %p1318_p3, %p1317_p10 }
  0x50   : > { %p1320_p9 = pnand %p1319_p7, %p1313_p1 }
  0x52   : > { %1323 = shalt.err (!%p1320_p9)
}
  0x53   : > { %s1324_s30 = scalar_lea.vmem %s1586_s10, 1024  ;;  %s1415_s15 = smov [#allocation2]  }
  0x54   : > { %p1325_p12 = scmp.ne.s32.totalorder %s1586_s10, %s1324_s30  ;;  %s1329_s16 = sshll.u32 %s1415_s15, 4  ;;  %s1330_s16 = int_to_ptr.vmem [resolvable:$false] %s1329_s16 }
  0x55   : > { %s1331_s9 = scalar_lea.vmem %s1330_s16, 2048  ;;  %p1332_p4 = scmp.lt.s32.totalorder %s1586_s10, %s1330_s16 }
  0x56   : > { %p1327_p2 = pnand %p1325_p12, %p1311_p0  ;;  %p1333_p13 = scmp.lt.s32.totalorder %s1331_s9, %s1324_s30 }
  0x58   : > { %p1328_p5 = pneg %p1327_p2  ;;  %p1334_p6 = por %p1333_p13, %p1332_p4 }
  0x5a   : > { %p1335_p10 = pnand %p1334_p6, %p1328_p5 }
  0x5c   : > { %1338 = shalt.err (!%p1335_p10)
}
  0x5d   : > { %s1416_s12 = smov 256   ;;  %s1417_s13 = smov 16  }
  0x5e   : > { %1142 = dma.hbm_to_vmem [thread:$0]  (!%p1588_p11), %s1584_s8, 1024, %s1586_s10, %s1592_s28, %s1416_s12, %s1416_s12, %s1417_s13  }
  0x5f   : > { %232 = sbr.rel (%p1491_p8) target bundleno = 912 (0x390), region = 40  ;;  %s1623_s29 = sand.u32 (!%p1491_p8), 1, %s1401_s19  }
  0x60   : > { %s972_s17 = sshll.u32 (!%p1491_p8), %s1623_s29, 6  ;;  %s235_s7 = scalar_lea.sflag (!%p1491_p8), [#allocation3], %s1623_s29 }
  0x61   : > { %s1627_s6 = scalar_lea.vmem (!%p1491_p8), [#allocation2], %s972_s17  ;;  %p1718_p4 = scmp.ne.s32.totalorder (!%p1491_p8), %s1711_s24, 0 }
  0x66   : > { %1384 = dma.done.wait (%p1718_p4), %s235_s7, 1024  }
  0x67   : > { %1386 = vsyncadd (%p1718_p4), %s235_s7, 4294966272  ;;  %p1719_p5 = scmp.eq.s32.totalorder %s1472_s22, 0 }
  0x69   : > { %1388 = dma.done.wait (%p1719_p5), [#allocation6], 5120   ;;  %p1720_p8 = pmov %p1719_p5 }
  0x6a   : > { %v1193_v0 = vld [vmem:[#allocation5 + $0x40] sm:$0xff]   ;;  %v1197_v4 = vld [vmem:[#allocation5 + $0x48] sm:$0xff]   ;;  %v1201_v8 = vld [vmem:[#allocation5 + $0x50] sm:$0xff]   ;;  %s975_s8 = sshll.u32 %s1623_s29, 5  ;;  %s1033_s15 = sshll.u32 %s1472_s22, 9 }
  0x6b   : > { %1390 = vsyncadd (%p1720_p8), [#allocation6], 4294962176  ;;  %v1194_v1 = vld [vmem:[#allocation5 + $0xc0] sm:$0xff]   ;;  %1034 = vmatprep.subr.bf16.mxu0 %v1193_v0  ;;  %v1198_v5 = vld [vmem:[#allocation5 + $0xc8] sm:$0xff]   ;;  %s272_s28 = scalar_lea.vmem [#allocation8], %s975_s8  ;;  %s1658_s12 = scalar_lea.hbm %s1707_s5, %s1033_s15 }
  0x6c   : > { %v1195_v2 = vld [vmem:[#allocation5] sm:$0xff]   ;;  %1062 = vmatprep.subr.bf16.mxu1 %v1194_v1  ;;  %v1199_v6 = vld [vmem:[#allocation5 + $0x8] sm:$0xff]   ;;  %v1202_v9 = vld [vmem:[#allocation5 + $0xd0] sm:$0xff]   ;;  %s870_s30 = sshll.u32 %s272_s28, 4  ;;  %s857_s22 = scalar_lea.sflag [#allocation4], %s1623_s29  ;;  %s1653_s30 = int_to_ptr.vmem [resolvable:$true] %s870_s30 }
  0x6d   : > { %v1196_v3 = vld [vmem:[#allocation5 + $0x80] sm:$0xff]   ;;  %1035 = vmatpush3.bf16.msra.mxu0 %v1195_v2  ;;  %v1200_v7 = vld [vmem:[#allocation5 + $0x88] sm:$0xff]   ;;  %v1203_v10 = vld [vmem:[#allocation5 + $0x10] sm:$0xff]   ;;  %s1339_s13 = scalar_lea.vmem %s1653_s30, 512  ;;  %p1721_p0 = scmp.ne.s32.totalorder %s1716_s23, 0 }
  0x6e   : > { %1063 = vmatpush3.bf16.msra.mxu1 %v1196_v3  ;;  %1036 = vmatprep.subr.bf16.mxu0 %v1197_v4  ;;  %v1204_v11 = vld [vmem:[#allocation5 + $0x90] sm:$0xff]   ;;  %v1205_v12 = vld [vmem:[#allocation5 + $0x58] sm:$0xff]   ;;  %v1209_v16 = vld [vmem:[#allocation5 + $0x60] sm:$0xff]   ;;  %p1340_p11 = scmp.ne.s32.totalorder %s1653_s30, %s1339_s13  ;;  %s1418_s17 = smov [#allocation8]  }
  0x6f   : > { %1064 = vmatprep.subr.bf16.mxu1 %v1198_v5  ;;  %v1206_v13 = vld [vmem:[#allocation5 + $0xd8] sm:$0xff]   ;;  %v1210_v17 = vld [vmem:[#allocation5 + $0xe0] sm:$0xff]   ;;  %v1213_v20 = vld [vmem:[#allocation5 + $0x68] sm:$0xff]   ;;  %s1343_s7 = sshll.u32 %s1418_s17, 4  ;;  %s1344_s7 = int_to_ptr.vmem [resolvable:$false] %s1343_s7 }
  0x70   : > { %v1207_v14 = vld [vmem:[#allocation5 + $0x18] sm:$0xff]   ;;  %v1211_v18 = vld [vmem:[#allocation5 + $0x20] sm:$0xff]   ;;  %v1214_v21 = vld [vmem:[#allocation5 + $0xe8] sm:$0xff]   ;;  %p1341_p1 = pnand %p1340_p11, %p1721_p0  ;;  %p1346_p7 = scmp.lt.s32.totalorder %s1653_s30, %s1344_s7 }
  0x71   : > { %1037 = vmatpush3.bf16.msra.mxu0 %v1199_v6  ;;  %v1208_v15 = vld [vmem:[#allocation5 + $0x98] sm:$0xff]   ;;  %v1212_v19 = vld [vmem:[#allocation5 + $0xa0] sm:$0xff]   ;;  %v1215_v22 = vld [vmem:[#allocation5 + $0x28] sm:$0xff]  }
  0x72   : > { %1065 = vmatpush3.bf16.msra.mxu1 %v1200_v7  ;;  %1038 = vmatprep.subr.bf16.mxu0 %v1201_v8  ;;  %v1216_v23 = vld [vmem:[#allocation5 + $0xa8] sm:$0xff]   ;;  %v1217_v24 = vld [vmem:[#allocation5 + $0x70] sm:$0xff]   ;;  %v1221_v28 = vld [vmem:[#allocation5 + $0x78] sm:$0xff]   ;;  %p1342_p3 = pneg %p1341_p1 }
  0x73   : > { %1066 = vmatprep.subr.bf16.mxu1 %v1202_v9  ;;  %v1218_v25 = vld [vmem:[#allocation5 + $0xf0] sm:$0xff]   ;;  %v1222_v29 = vld [vmem:[#allocation5 + $0xf8] sm:$0xff]   ;;  %v976_v42 = vld [vmem:[%s1704_s2] ss:$0 sm:$0xff] }
  0x74   : > { %v1219_v26 = vld [vmem:[#allocation5 + $0x30] sm:$0xff]   ;;  %v1223_v30 = vld [vmem:[#allocation5 + $0x38] sm:$0xff]   ;;  %v1237_v9 = vld [vmem:[#allocation7] sm:$0xff]  }
  0x75   : > { %1039 = vmatpush3.bf16.msra.mxu0 %v1203_v10  ;;  %v1220_v27 = vld [vmem:[#allocation5 + $0xb0] sm:$0xff]   ;;  %v1224_v31 = vld [vmem:[#allocation5 + $0xb8] sm:$0xff]  }
  0x76   : > { %1067 = vmatpush3.bf16.msra.mxu1 %v1204_v11  ;;  %1040 = vmatprep.subr.bf16.mxu0 %v1205_v12  ;;  %v1225_v32 = vld [vmem:[%s1627_s6] ss:$16 sps:$4 sm:$0xff]   ;;  %v1227_v33 = vld [vmem:[%s1627_s6 + $0x4] ss:$16 sps:$4 sm:$0xff]   ;;  %v1228_v34 = vld [vmem:[%s1627_s6 + $0x8] ss:$16 sps:$4 sm:$0xff]  }
  0x77   : > { %1068 = vmatprep.subr.bf16.mxu1 %v1206_v13  ;;  %v1230_v35 = vld [vmem:[%s1627_s6 + $0xc] ss:$16 sps:$4 sm:$0xff]   ;;  %619 = vmatprep.mubr.bf16.mxu0 %v1227_v33  ;;  %v1231_v36 = vld [vmem:[%s1627_s6 + $0x24] ss:$16 sps:$4 sm:$0xff]   ;;  %v1235_v38 = vld [vmem:[%s1627_s6 + $0x20] ss:$16 sps:$4 sm:$0xff]  }
  0x78   : > { %668 = vmatprep.mubr.bf16.mxu1 %v1230_v35  ;;  %v1233_v37 = vld [vmem:[%s1627_s6 + $0x2c] ss:$16 sps:$4 sm:$0xff]   ;;  %v1236_v39 = vld [vmem:[%s1627_s6 + $0x28] ss:$16 sps:$4 sm:$0xff]   ;;  %s1345_s6 = scalar_lea.vmem %s1344_s7, 1024 }
  0x79   : > { %1041 = vmatpush3.bf16.msra.mxu0 %v1207_v14  ;;  %p1347_p9 = scmp.lt.s32.totalorder %s1345_s6, %s1339_s13 }
  0x7a   : > { %1069 = vmatpush3.bf16.msra.mxu1 %v1208_v15  ;;  %1042 = vmatprep.subr.bf16.mxu0 %v1209_v16 }
  0x7b   : > { %1070 = vmatprep.subr.bf16.mxu1 %v1210_v17  ;;  %p1348_p12 = por %p1347_p9, %p1346_p7 }
  0x7d   : > { %1043 = vmatpush3.bf16.msra.mxu0 %v1211_v18  ;;  %p1349_p2 = pnand %p1348_p12, %p1342_p3 }
  0x7e   : > { %1071 = vmatpush3.bf16.msra.mxu1 %v1212_v19  ;;  %1044 = vmatprep.subr.bf16.mxu0 %v1213_v20 }
  0x7f   : > { %1072 = vmatprep.subr.bf16.mxu1 %v1214_v21 }
  0x81   : > { %1045 = vmatpush3.bf16.msra.mxu0 %v1215_v22 }
  0x82   : > { %1073 = vmatpush3.bf16.msra.mxu1 %v1216_v23  ;;  %1046 = vmatprep.subr.bf16.mxu0 %v1217_v24 }
  0x83   : > { %1074 = vmatprep.subr.bf16.mxu1 %v1218_v25 }
  0x85   : > { %1047 = vmatpush3.bf16.msra.mxu0 %v1219_v26  ;;  %v1238_v26 = vld [vmem:[#allocation7 + $0x8] sm:$0xff]  }
  0x86   : > { %1075 = vmatpush3.bf16.msra.mxu1 %v1220_v27  ;;  %1048 = vmatprep.subr.bf16.mxu0 %v1221_v28  ;;  %v1239_v27 = vld [vmem:[#allocation7 + $0x10] sm:$0xff]   ;;  %v1240_v28 = vld [vmem:[#allocation7 + $0x18] sm:$0xff]  }
  0x87   : > { %1076 = vmatprep.subr.bf16.mxu1 %v1222_v29  ;;  %v1241_v29 = vld [vmem:[#allocation7 + $0x20] sm:$0xff]  }
  0x89   : > { %1049 = vmatpush3.bf16.msra.mxu0 %v1223_v30  ;;  %v1242_v30 = vld [vmem:[#allocation7 + $0x28] sm:$0xff]  }
  0x8a   : > { %1077 = vmatpush3.bf16.msra.mxu1 %v1224_v31  ;;  %1100 = vmatprep.subr.bf16.mxu0 %v1237_v9  ;;  %v1243_v31 = vld [vmem:[#allocation7 + $0x30] sm:$0xff]  }
  0x8c   : > { %620 = vmatmul.mubr.bf16.vlgmr.msra.gmra.mrb[0].mxu0 %v1225_v32  ;;  %v1244_v32 = vld [vmem:[#allocation7 + $0x38] sm:$0xff]  }
  0x8d   : > { %669 = vmatmul.mubr.bf16.vlgmr.msra.gmra.mrb[0].mxu1 %v1228_v34  ;;  %627 = vmatprep.mubr.bf16.mxu0 %v1231_v36 }
  0x8e   : > { %676 = vmatprep.mubr.bf16.mxu1 %v1233_v37  ;;  %1101 = vmatpush3.bf16.msra.mxu0 %v1237_v9 }
  0x8f   : > { %1102 = vmatprep.subr.bf16.mxu0 %v1238_v26 }
  0x92   : > { %1103 = vmatpush3.bf16.msra.mxu0 %v1238_v26 }
  0x93   : > { %1104 = vmatprep.subr.bf16.mxu0 %v1239_v27 }
  0x94   : > { %628 = vmatmul.mubr.bf16.gmra.mrb[4].mxu0 %v1235_v38 }
  0x95   : > { %677 = vmatmul.mubr.bf16.gmra.mrb[4].mxu1 %v1236_v39 }
  0x96   : > { %1105 = vmatpush3.bf16.msra.mxu0 %v1239_v27 }
  0x97   : > { %1106 = vmatprep.subr.bf16.mxu0 %v1240_v28 }
  0x9a   : > { %1107 = vmatpush3.bf16.msra.mxu0 %v1240_v28 }
  0x9b   : > { %1108 = vmatprep.subr.bf16.mxu0 %v1241_v29 }
  0x9e   : > { %1109 = vmatpush3.bf16.msra.mxu0 %v1241_v29 }
  0x9f   : > { %1110 = vmatprep.subr.bf16.mxu0 %v1242_v30 }
  0xa2   : > { %1111 = vmatpush3.bf16.msra.mxu0 %v1242_v30 }
  0xa3   : > { %1112 = vmatprep.subr.bf16.mxu0 %v1243_v31 }
  0xa6   : > { %1113 = vmatpush3.bf16.msra.mxu0 %v1243_v31 }
  0xa7   : > { %1114 = vmatprep.subr.bf16.mxu0 %v1244_v32 }
  0xaa   : > { %1115 = vmatpush3.bf16.msra.mxu0 %v1244_v32 }
 0x15f   : > { %v1050_v40 = vpop.f32.mrb[0].mxu0 }
 0x160   : > { %v1078_v41 = vpop.f32.mrb[0].mxu1  ;;  %v1051_v43 = vpop.f32.mrb[1].mxu0 }
 0x161   : > { %v1052_v44 = vadd.f32 %v1051_v43, %v1050_v40  ;;  %v1079_v45 = vpop.f32.mrb[1].mxu1  ;;  %v1053_v46 = vpop.f32.mrb[2].mxu0 }
 0x162   : > { %v1080_v47 = vadd.f32 %v1079_v45, %v1078_v41  ;;  %v1081_v48 = vpop.f32.mrb[2].mxu1  ;;  %v1054_v49 = vpop.f32.mrb[3].mxu0 }
 0x163   : > { %v622_v50 = vadd.f32 %v1052_v44, %v976_v42  ;;  %v1055_v51 = vadd.f32 %v1054_v49, %v1053_v46  ;;  %v1082_v52 = vpop.f32.mrb[3].mxu1 }
 0x164   : > { %v1083_v53 = vadd.f32 %v1082_v52, %v1081_v48 }
 0x165   : > { %v625_v54 = vadd.f32 %v1055_v51, %v976_v42  ;;  %v671_v55 = vadd.f32 %v1080_v47, %v622_v50 }
 0x167   : > { %v1056_v56 = vpop.f32.mrb[4].mxu0  ;;  %685 = vadd.xlane.f32.xlu0 %v671_v55  ;;  %v674_v57 = vadd.f32 %v1083_v53, %v625_v54 }
 0x168   : > { %v1084_v58 = vpop.f32.mrb[4].mxu1  ;;  %v1057_v59 = vpop.f32.mrb[5].mxu0 }
 0x169   : > { %v1058_v60 = vadd.f32 %v1057_v59, %v1056_v56  ;;  %v1085_v61 = vpop.f32.mrb[5].mxu1  ;;  %v1059_v62 = vpop.f32.mrb[6].mxu0 }
 0x16a   : > { %v1086_v63 = vadd.f32 %v1085_v61, %v1084_v58  ;;  %v1087_v0 = vpop.f32.mrb[6].mxu1  ;;  %v1060_v1 = vpop.f32.mrb[7].mxu0 }
 0x16b   : > { %v630_v2 = vadd.f32 %v1058_v60, %v976_v42  ;;  %v1061_v3 = vadd.f32 %v1060_v1, %v1059_v62  ;;  %v1088_v4 = vpop.f32.mrb[7].mxu1  ;;  %687 = vadd.xlane.f32.xlu0 %v674_v57 }
 0x16c   : > { %v1089_v5 = vadd.f32 %v1088_v4, %v1087_v0 }
 0x16d   : > { %v633_v6 = vadd.f32 %v1061_v3, %v976_v42  ;;  %v679_v7 = vadd.f32 %v1086_v63, %v630_v2 }
 0x16f   : > { %689 = vadd.xlane.f32.xlu1 %v679_v7  ;;  %v682_v8 = vadd.f32 %v1089_v5, %v633_v6 }
 0x173   : > { %691 = vadd.xlane.f32.xlu1 %v682_v8 }
 0x1f4   : > { %v686_v10 = vpop.xlane.xlu0 %685 }
 0x1f5   : > { %v694_v11 = vmul.f32 0.0078125, %v686_v10 }
 0x1f7   : > { %v698_v12 = vsub.f32 %v671_v55, %v694_v11  ;;  %v1017_v55 = vld [vmem:[%s1706_s4] ss:$0 sm:$0xff] }
 0x1f8   : > { %v688_v13 = vpop.xlane.xlu0 %687 }
 0x1f9   : > { %v695_v14 = vmul.f32 0.0078125, %v688_v13  ;;  %v702_v15 = vmul.f32 %v698_v12, %v698_v12 }
 0x1fb   : > { %v699_v16 = vsub.f32 %v674_v57, %v695_v14  ;;  %706 = vadd.xlane.f32.xlu0 %v702_v15 }
 0x1fc   : > { %v690_v17 = vpop.xlane.xlu1 %689 }
 0x1fd   : > { %v696_v18 = vmul.f32 0.0078125, %v690_v17  ;;  %v703_v19 = vmul.f32 %v699_v16, %v699_v16 }
 0x1ff   : > { %v700_v20 = vsub.f32 %v679_v7, %v696_v18  ;;  %708 = vadd.xlane.f32.xlu1 %v703_v19 }
 0x200   : > { %v692_v21 = vpop.xlane.xlu1 %691 }
 0x201   : > { %v697_v22 = vmul.f32 0.0078125, %v692_v21  ;;  %v704_v23 = vmul.f32 %v700_v20, %v700_v20 }
 0x203   : > { %v701_v24 = vsub.f32 %v682_v8, %v697_v22  ;;  %710 = vadd.xlane.f32.xlu0 %v704_v23 }
 0x205   : > { %v705_v25 = vmul.f32 %v701_v24, %v701_v24 }
 0x207   : > { %712 = vadd.xlane.f32.xlu1 %v705_v25 }
 0x288   : > { %v707_v33 = vpop.xlane.xlu0 %706 }
 0x289   : > { %v714_v34 = vmul.f32 0.0078125, %v707_v33 }
 0x28b   : > { %v718_v35 = vadd.f32 1e-05, %v714_v34 }
 0x28c   : > { %v709_v36 = vpop.xlane.xlu1 %708 }
 0x28d   : > { %v715_v37 = vmul.f32 0.0078125, %v709_v36  ;;  %1245 = vrsqrt.f32 %v718_v35 }
 0x28f   : > { %v719_v38 = vadd.f32 1e-05, %v715_v37 }
 0x290   : > { %v711_v39 = vpop.xlane.xlu0 %710 }
 0x291   : > { %1247 = vrsqrt.f32 %v719_v38  ;;  %v716_v40 = vmul.f32 0.0078125, %v711_v39 }
 0x293   : > { %v720_v41 = vadd.f32 1e-05, %v716_v40 }
 0x294   : > { %v713_v42 = vpop.xlane.xlu1 %712 }
 0x295   : > { %v717_v43 = vmul.f32 0.0078125, %v713_v42  ;;  %1249 = vrsqrt.f32 %v720_v41 }
 0x297   : > { %v721_v44 = vadd.f32 1e-05, %v717_v43  ;;  %v1246_v45 = vpop.eup %1245 }
 0x298   : > { %v726_v47 = vmul.f32 %v1246_v45, %v698_v12 }
 0x299   : > { %1251 = vrsqrt.f32 %v721_v44 }
 0x29b   : > { %v1248_v46 = vpop.eup %1247 }
 0x29c   : > { %v727_v48 = vmul.f32 %v1248_v46, %v699_v16 }
 0x29e   : > { %v730_v49 = vpack.c.bf16 %v727_v48, %v726_v47 }
 0x29f   : > { %v1250_v50 = vpop.eup %1249 }
 0x2a0   : > { %1116 = vmatprep.mubr.bf16.mxu0 %v730_v49  ;;  %v728_v52 = vmul.f32 %v1250_v50, %v700_v20 }
 0x2a3   : > { %v1252_v51 = vpop.eup %1251 }
 0x2a4   : > { %v729_v53 = vmul.f32 %v1252_v51, %v701_v24 }
 0x2a6   : > { %v731_v54 = vpack.c.bf16 %v729_v53, %v728_v52 }
 0x2a8   : > { %1117 = vmatmul.mubr.bf16.vlgmr.msra.gmra.mrb[8].mxu0 %v731_v54 }
 0x37b   : > { %v1118_v56 = vpop.f32.mrb[8].mxu0 }
 0x37c   : > { %v846_v57 = vadd.f32 %v1118_v56, %v1017_v55  ;;  %v837_v58 = vpop.f32.mrb[9].mxu0 }
 0x37d   : > { %v838_v59 = vadd.f32 %v1017_v55, %v837_v58  ;;  %v1119_v60 = vpop.f32.mrb[10].mxu0 }
 0x37e   : > { %854 = vst [vmem:[%s272_s28 + $0x10] sm:$0xff] %v846_v57  ;;  %v849_v61 = vadd.f32 %v1119_v60, %v1017_v55  ;;  %v840_v62 = vpop.f32.mrb[11].mxu0 }
 0x37f   : > { %852 = vst [vmem:[%s272_s28] sm:$0xff] %v838_v59  ;;  %v841_v63 = vadd.f32 %v1017_v55, %v840_v62 }
 0x380   : > { %855 = vst [vmem:[%s272_s28 + $0x18] sm:$0xff] %v849_v61 }
 0x381   : > { %853 = vst [vmem:[%s272_s28 + $0x8] sm:$0xff] %v841_v63 }
 0x382   : > { %1352 = shalt.err (!%p1349_p2)
}
 0x383   : > { %s1353_s24 = scalar_lea.hbm %s1658_s12, 512  ;;  %s1357_s10 = scalar_lea.hbm %s1707_s5, 1024 }
 0x384   : > { %p1354_p13 = scmp.ne.s32.totalorder %s1658_s12, %s1353_s24  ;;  %p1358_p4 = scmp.lt.u32.totalorder %s1658_s12, %s1707_s5 }
 0x385   : > { %p1359_p5 = scmp.lt.u32.totalorder %s1357_s10, %s1353_s24  ;;  %p1361_p11 = scmp.lt.u32.totalorder %s1353_s24, %s1658_s12 }
 0x386   : > { %p1355_p6 = pnand %p1354_p13, %p1721_p0 }
 0x387   : > { %p1360_p8 = por %p1359_p5, %p1358_p4 }
 0x388   : > { %p1356_p10 = pneg %p1355_p6 }
 0x389   : > { %p1362_p1 = por %p1361_p11, %p1360_p8 }
 0x38b   : > { %p1363_p3 = pnand %p1362_p1, %p1356_p10 }
 0x38d   : > { %1366 = shalt.err (!%p1363_p3)
}
 0x38e   : > { %s1419_s15 = smov 128   ;;  %s1420_s16 = smov 8  }
 0x38f   : > { %1130 = dma.vmem_to_hbm [thread:$0]  (%p1721_p0), %s1653_s30, 512, %s1658_s12, %s857_s22, %s1419_s15, %s1419_s15, %s1420_s16  }
 0x390 PF: > { %s885_s9 = sand.u32 1, %s1397_s18   ;;  %p1722_p7 = scmp.ne.s32.totalorder %s1712_s25, 0 }
 0x391   : > { %p1723_p9 = scmp.ge.s32.totalorder %s1409_s21, 2  ;;  %s886_s13 = scalar_lea.sflag [#allocation4], %s885_s9 }
 0x393   : > { %p1144_p12 = pnand %p1723_p9, %p1722_p7 }
 0x395   : > { %1392 = dma.done.wait (!%p1144_p12), %s886_s13, 512  }
 0x396   : > { %1394 = vsyncadd (!%p1144_p12), %s886_s13, 4294966784  ;;  %p19_p2 = scmp.ge.s32.totalorder %s1561_s14, 4   ;;  %s1724_s18 = smov %s1401_s19 }
 0x397   : > { %s1725_s19 = smov %s1405_s20  ;;  %s1726_s20 = smov %s1577_s27 }
 0x398   : > { %s1727_s21 = smov %s1561_s14  ;;  %21 = sbr.rel (!%p19_p2) target bundleno = 6 (0x6), region = 93 }
 0x39f   :  { %891 = vsyncpa [#allocation3], 1 }
 0x3a0   :  { %893 = vsyncpa [#allocation3 + $0x1], 1 }
 0x3a1   :  { %894 = vsyncpa [#allocation6], 1 }
 0x3a2   :  { %895 = vsyncpa [#allocation4], 1 }
 0x3a3   :  { %897 = vsyncpa [#allocation4 + $0x1], 1 }

</bundles_post_ra>
